<compile_context>
chip_gen: v7x
topology: tpu7x:2x2x1
jax: 0.10.0
libtpu: 0.0.40
codegen_flags: <defaults>
</compile_context>

<pallas_src>
import jax
import jax.numpy as jnp
from jax import lax
from jax.experimental import pallas as pl
from jax.experimental.pallas import tpu as pltpu


def _vmem_limit_bytes():
    """~3/4 of per-core VMEM: ~48 MiB on v7x, ~96 MiB on v5e/v6e; safe fallback otherwise."""
    try:
        cap = int(pltpu.get_tpu_info().vmem_capacity_bytes)
    except Exception:
        cap = 64 * 1024 * 1024
    return cap * 3 // 4


def _pick_t_tile(n_batch, t_pad, cap):
    """Largest 8-aligned divisor of t_pad <= cap, preferring >= 2 total grid steps."""
    cands = [t for t in range(8, min(cap, t_pad) + 1, 8) if t_pad % t == 0]
    if not cands:
        return t_pad
    multi = [t for t in cands if n_batch * (t_pad // t) >= 2]
    return max(multi) if multi else max(cands)


def conv_spatial_graphical(x, A, weight, bias, *, tt_cap=128, compute_dtype=jnp.bfloat16):
    """x: (N, Cin, T, V) NCHW, A: (K, V, W), weight: (K*C, Cin, 1, 1), bias: (K*C,).

    Returns (out, A) with out: (N, C, T, W) float32, matching
    einsum('nkctv,kvw->nctw', conv1x1(x).view(N, K, C, T, V), A).
    """
    N, Cin, T, V = x.shape
    K, V2, W = A.shape
    KC = weight.shape[0]
    assert V2 == V, "A joint dim must match x"
    assert KC % K == 0, "conv out-channels must be divisible by A.shape[0]"
    C = KC // K

    # Pad T to a multiple of 8 so every (tt, V)/(tt, W) block is sublane-legal and the grid
    # always has >= 2 pipelined steps (padded rows are sliced off at the end).
    T_pad = ((T + 7) // 8) * 8
    if T_pad != T:
        x = jnp.pad(x, ((0, 0), (0, 0), (0, T_pad - T), (0, 0)))
    tt = _pick_t_tile(N, T_pad, tt_cap)
    grid = (N, T_pad // tt)

    # Tiny host-side operand prep (weights/bias only -- the activation x is untouched).
    a2 = jnp.transpose(A, (1, 0, 2)).reshape(V, K * W).astype(compute_dtype)        # [v, (k,w)]
    w2 = jnp.transpose(weight.reshape(K, C, Cin), (0, 2, 1)).reshape(K * Cin, C)    # [(k,i), c]
    w2 = w2.astype(compute_dtype)
    bias_cw = jnp.einsum('kc,kvw->cw',                                               # (C, W) f32
                         bias.reshape(K, C).astype(jnp.float32), A.astype(jnp.float32))

    def kernel(x_ref, a_ref, w_ref, b_ref, o_ref):
        # x_ref: (Cin, tt, V) f32 | a_ref: (V, K*W) bf16 | w_ref: (K*Cin, C) bf16
        # b_ref: (C, W) f32       | o_ref: (C, tt, W) f32
        xt = x_ref[...].reshape(Cin * tt, V).astype(compute_dtype)    # leading-dim merge (free)
        # matmul 1 -- graph contraction: rows (i,t), cols (k,w)
        z = jnp.dot(xt, a_ref[...], preferred_element_type=jnp.float32)
        z = z.astype(compute_dtype)                                   # cast BEFORE the bridge
        # bridge: rows (i,t) x cols (k,w) -> rows (k,i) x cols (t,w)  (single transpose, bf16)
        lhs = jnp.transpose(z.reshape(Cin, tt, K, W), (2, 0, 1, 3)).reshape(K * Cin, tt * W)
        # matmul 2 -- 1x1 conv: contraction depth K*Cin, output width C (transposed-LHS matmul)
        out = lax.dot_general(w_ref[...], lhs,
                              dimension_numbers=(((0,), (0,)), ((), ())),
                              preferred_element_type=jnp.float32)     # (C, tt*W)
        out = out.reshape(C, tt, W) + b_ref[...][:, None, :]          # hoisted bias, f32
        o_ref[...] = out.astype(o_ref.dtype)

    flops = 2 * N * T_pad * Cin * V * K * W + 2 * N * T_pad * W * K * Cin * C
    bytes_accessed = (x.size * x.dtype.itemsize + a2.size * 2 + w2.size * 2
                      + bias_cw.size * 4 + N * C * T_pad * W * 4)

    out = pl.pallas_call(
        kernel,
        out_shape=jax.ShapeDtypeStruct((N, C, T_pad, W), jnp.float32),
        grid_spec=pltpu.PrefetchScalarGridSpec(
            num_scalar_prefetch=0,
            grid=grid,
            in_specs=[
                pl.BlockSpec((None, Cin, tt, V), lambda n, j: (n, 0, j, 0)),   # x, NCHW direct
                pl.BlockSpec((V, K * W), lambda n, j: (0, 0)),                 # stacked A
                pl.BlockSpec((K * Cin, C), lambda n, j: (0, 0)),               # stacked conv W
                pl.BlockSpec((C, W), lambda n, j: (0, 0)),                     # hoisted bias
            ],
            out_specs=pl.BlockSpec((None, C, tt, W), lambda n, j: (n, 0, j, 0)),  # NCTW direct
        ),
        compiler_params=pltpu.CompilerParams(
            dimension_semantics=("parallel", "parallel"),
            vmem_limit_bytes=_vmem_limit_bytes(),
        ),
        cost_estimate=pl.CostEstimate(flops=flops, transcendentals=0,
                                      bytes_accessed=bytes_accessed),
    )(x, a2, w2, bias_cw)

    if T_pad != T:
        out = out[:, :, :T, :]
    # TODO(synk): on v5e, if profiling shows exposed DMA, add pipeline_mode=pl.Buffered(3)
    # to the x in_spec.
    return out, A


if __name__ == "__main__":
    key = jax.random.PRNGKey(0)
    k1, k2, k3, k4 = jax.random.split(key, 4)

    # Small, module-consistent shapes.
    N, Cin, T, V = 2, 4, 8, 16
    K = 2                    # number of spatial graph kernels (= A.shape[0])
    out_channels = 16        # K*C  ->  C = 8
    C = out_channels // K

    x = jax.random.normal(k1, (N, Cin, T, V), jnp.float32)
    A = jax.random.normal(k2, (K, V, V), jnp.float32)
    weight = jax.random.normal(k3, (out_channels, Cin, 1, 1), jnp.float32) * 0.1
    bias = jax.random.normal(k4, (out_channels,), jnp.float32) * 0.1

    out, A_out = conv_spatial_graphical(x, A, weight, bias)
    out = jax.block_until_ready(out)

    # Pure-JAX f32 reference (exactly mirrors the PyTorch forward).
    y_ref = (jnp.einsum('nitv,oi->notv', x, weight.reshape(out_channels, Cin))
             + bias[None, :, None, None])
    ref = jnp.einsum('nkctv,kvw->nctw', y_ref.reshape(N, K, C, T, V), A)

    assert out.shape == ref.shape == (N, C, T, V)
    err = float(jnp.max(jnp.abs(out - ref)))
    # bf16 MXU inputs with f32 accumulation -> bf16-appropriate tolerance vs f32 ref.
    assert jnp.allclose(out, ref, atol=5e-2, rtol=5e-2), err
    assert jnp.allclose(A_out, A)
    print("KERNEL_OK")
</pallas_src>

<mosaic_0001>
module attributes {stable_mosaic.version = 11 : i64} {
  func.func @kernel(%arg0: i32, %arg1: i32, %arg2: memref<1x4x8x16xf32, #tpu.memory_space<vmem>>, %arg3: memref<16x32xbf16, #tpu.memory_space<vmem>>, %arg4: memref<8x8xbf16, #tpu.memory_space<vmem>>, %arg5: memref<8x16xf32, #tpu.memory_space<vmem>>, %arg6: memref<1x8x8x16xf32, #tpu.memory_space<vmem>>) attributes {dimension_semantics = [#tpu.dimension_semantics<parallel>, #tpu.dimension_semantics<parallel>], iteration_bounds = array<i64: 2, 1>, scalar_prefetch = 0 : i64, scratch_operands = 0 : i64, tpu.core_type = #tpu.core_type<tc>, window_params = [{transform_indices = @transform_0, window_bounds = array<i64: 1, 4, 8, 16>}, {pipeline_mode = #tpu.pipeline_mode<synchronous>, transform_indices = @transform_1, window_bounds = array<i64: 16, 32>}, {pipeline_mode = #tpu.pipeline_mode<synchronous>, transform_indices = @transform_2, window_bounds = array<i64: 8, 8>}, {pipeline_mode = #tpu.pipeline_mode<synchronous>, transform_indices = @transform_3, window_bounds = array<i64: 8, 16>}, {transform_indices = @transform_4, window_bounds = array<i64: 1, 8, 8, 16>}]} {
    %c0 = arith.constant 0 : index
    %c0_0 = arith.constant 0 : index
    %c0_1 = arith.constant 0 : index
    %c0_2 = arith.constant 0 : index
    %0 = vector.load %arg2[%c0, %c0_0, %c0_1, %c0_2] : memref<1x4x8x16xf32, #tpu.memory_space<vmem>>, vector<1x4x8x16xf32>
    %1 = vector.shape_cast %0 : vector<1x4x8x16xf32> to vector<4x8x16xf32>
    %2 = vector.shape_cast %1 : vector<4x8x16xf32> to vector<32x16xf32>
    %3 = arith.truncf %2 : vector<32x16xf32> to vector<32x16xbf16>
    %c0_3 = arith.constant 0 : index
    %c0_4 = arith.constant 0 : index
    %4 = vector.load %arg3[%c0_3, %c0_4] : memref<16x32xbf16, #tpu.memory_space<vmem>>, vector<16x32xbf16>
    %cst = arith.constant dense<0.000000e+00> : vector<32x32xf32>
    %5 = tpu.matmul %3, %4, %cst {dimension_numbers = #tpu.dot_dimension_numbers<[1], [0], [0], [1], [0, 0, 1, 1], [], []>} : vector<32x16xbf16>, vector<16x32xbf16>, vector<32x32xf32> -> vector<32x32xf32>
    %6 = arith.truncf %5 : vector<32x32xf32> to vector<32x32xbf16>
    %7 = vector.shape_cast %6 : vector<32x32xbf16> to vector<4x8x2x16xbf16>
    %8 = tpu.transpose %7, [2, 0, 1, 3] : vector<4x8x2x16xbf16> -> vector<2x4x8x16xbf16>
    %9 = vector.shape_cast %8 : vector<2x4x8x16xbf16> to vector<8x128xbf16>
    %c0_5 = arith.constant 0 : index
    %c0_6 = arith.constant 0 : index
    %10 = vector.load %arg4[%c0_5, %c0_6] : memref<8x8xbf16, #tpu.memory_space<vmem>>, vector<8x8xbf16>
    %cst_7 = arith.constant dense<0.000000e+00> : vector<8x128xf32>
    %11 = tpu.matmul %10, %9, %cst_7 {dimension_numbers = #tpu.dot_dimension_numbers<[0], [0], [1], [1], [0, 1, 1, 1], [], []>} : vector<8x8xbf16>, vector<8x128xbf16>, vector<8x128xf32> -> vector<8x128xf32>
    %12 = vector.shape_cast %11 : vector<8x128xf32> to vector<8x8x16xf32>
    %c0_8 = arith.constant 0 : index
    %c0_9 = arith.constant 0 : index
    %13 = vector.load %arg5[%c0_8, %c0_9] : memref<8x16xf32, #tpu.memory_space<vmem>>, vector<8x16xf32>
    %14 = vector.shape_cast %13 : vector<8x16xf32> to vector<8x1x16xf32>
    %15 = vector.broadcast %14 : vector<8x1x16xf32> to vector<8x8x16xf32>
    %16 = arith.addf %12, %15 : vector<8x8x16xf32>
    %c0_10 = arith.constant 0 : index
    %c0_11 = arith.constant 0 : index
    %c0_12 = arith.constant 0 : index
    %c0_13 = arith.constant 0 : index
    %17 = vector.load %arg6[%c0_10, %c0_11, %c0_12, %c0_13] : memref<1x8x8x16xf32, #tpu.memory_space<vmem>>, vector<1x8x8x16xf32>
    %18 = vector.shape_cast %17 : vector<1x8x8x16xf32> to vector<8x8x16xf32>
    %19 = vector.shape_cast %16 : vector<8x8x16xf32> to vector<1x8x8x16xf32>
    tpu.vector_store %arg6[%c0_10, %c0_11, %c0_12, %c0_13], %19 {strides = array<i32>} : memref<1x8x8x16xf32, #tpu.memory_space<vmem>>, vector<1x8x8x16xf32>,
    return
  }
  func.func @transform_0(%arg0: i32, %arg1: i32) -> (i32, i32, i32, i32) {
    %c0_i32 = arith.constant 0 : i32
    %c0_i32_0 = arith.constant 0 : i32
    %c0_i32_1 = arith.constant 0 : i32
    return %arg0, %c0_i32, %arg1, %c0_i32_0 : i32, i32, i32, i32
  }
  func.func @transform_1(%arg0: i32, %arg1: i32) -> (i32, i32) {
    %c0_i32 = arith.constant 0 : i32
    %c0_i32_0 = arith.constant 0 : i32
    %c0_i32_1 = arith.constant 0 : i32
    return %c0_i32, %c0_i32_0 : i32, i32
  }
  func.func @transform_2(%arg0: i32, %arg1: i32) -> (i32, i32) {
    %c0_i32 = arith.constant 0 : i32
    %c0_i32_0 = arith.constant 0 : i32
    %c0_i32_1 = arith.constant 0 : i32
    return %c0_i32, %c0_i32_0 : i32, i32
  }
  func.func @transform_3(%arg0: i32, %arg1: i32) -> (i32, i32) {
    %c0_i32 = arith.constant 0 : i32
    %c0_i32_0 = arith.constant 0 : i32
    %c0_i32_1 = arith.constant 0 : i32
    return %c0_i32, %c0_i32_0 : i32, i32
  }
  func.func @transform_4(%arg0: i32, %arg1: i32) -> (i32, i32, i32, i32) {
    %c0_i32 = arith.constant 0 : i32
    %c0_i32_0 = arith.constant 0 : i32
    %c0_i32_1 = arith.constant 0 : i32
    return %arg0, %c0_i32, %arg1, %c0_i32_0 : i32, i32, i32, i32
  }
}

</mosaic_0001>

<bundles_post_ra>
// kernel: tpu_custom_call.1
= control target key start
LH: loop header
LB: loop body
LE: loop exit
PB: predicated region body
PF: predicated region fallthrough
CT: control target
= control target key end

     0   :  { %9 = vsyncpa [#allocation3], 0  ;;  %s2140_s0 = inlined_call_operand.hbm [shape: f32[2,4,8,16], index: 0, kind: input, shape index: {}]   ;;  %s2141_s1 = inlined_call_operand.hbm [shape: bf16[16,32], index: 1, kind: input, shape index: {}]   ;;  %s2142_s2 = inlined_call_operand.hbm [shape: bf16[8,8], index: 2, kind: input, shape index: {}]   ;;  %s2143_s3 = inlined_call_operand.vmem [shape: f32[8,16], index: 3, kind: input, shape index: {}]   ;;  %s2144_s4 = inlined_call_operand.hbm [shape: f32[2,8,8,16], index: 4, kind: output, shape index: {}]  }
   0x1   :  { %11 = vsyncpa [#allocation3 + $0x1], 0 }
   0x2   :  { %12 = vsyncpa [#allocation6], 0 }
   0x3   :  { %13 = vsyncpa [#allocation4], 0 }
   0x4   :  { %15 = vsyncpa [#allocation4 + $0x1], 0  ;;  %s1732_s15 = smov 0   ;;  %s1734_s16 = smov 0  }
   0x5   :  { %s1736_s17 = smov 0   ;;  %s1738_s18 = smov 0  }
   0x6   :  { %s1740_s19 = smov 0   ;;  %s1742_s20 = smov 0  }
   0x7 LB: > { %s1356_s21 = sadd.s32 4294967295, %s1682_s20   ;;  %s1357_s22 = sadd.s32 4294967294, %s1682_s20   ;;  %s1682_s20 = sphi %s1742_s20, %s21_s20   ;;  %s1678_s19 = sphi %s1740_s19, %s2166_s19   ;;  %s1674_s18 = sphi %s1738_s18, %s2165_s18   ;;  %s1670_s17 = sphi %s1736_s17, %s2164_s17   ;;  %s1666_s16 = sphi %s1734_s16, %s2163_s16   ;;  %s1662_s15 = sphi %s1732_s15, %s2162_s15  }
   0x8   : > { %p55_p0 = scmp.ne.s32.totalorder %s1666_s16, %s1662_s15  ;;  %p1766_p1 = scmp.eq.s32.totalorder %s1356_s21, 0 }
   0x9   : > { %p1770_p2 = scmp.eq.s32.totalorder %s1356_s21, 1  ;;  %p150_p3 = scmp.eq.s32.totalorder %s1357_s22, 1 }
   0xa   : > { %s2149_s23 = scalar_select %p1766_p1, 1, 0 }
   0xb   : > { %p1776_p4 = por %p1766_p1, %p55_p0  ;;  %p1358_p5 = scmp.ge.s32.totalorder %s1682_s20, 1 }
   0xc   : > { %p1781_p6 = por %p150_p3, %p55_p0  ;;  %p157_p7 = scmp.lt.s32.totalorder %s1682_s20, 3 }
   0xd   : > { %s2151_s25 = scalar_select %p1776_p4, 1, 0 }
   0xe   : > { %s2152_s26 = scalar_select %p1781_p6, 1, 0 }
   0xf   : > { %p1786_p8 = pnand %p1358_p5, %p157_p7  ;;  %s1684_s28 = smov [#allocation5]  }
  0x10   : > { %s169_s29 = sshll.u32 %s1684_s28, 4  ;;  %s1685_s5 = smov [#allocation7]   ;;  %s1790_s29 = int_to_ptr.vmem [resolvable:$true] %s169_s29 }
  0x11   : > { %p1418_p9 = pneg %p1786_p8  ;;  %s183_s6 = sshll.u32 %s1685_s5, 4  ;;  %s1801_s6 = int_to_ptr.vmem [resolvable:$true] %s183_s6 }
  0x12   : > { %s1510_s9 = scalar_lea.hbm %s2141_s1, 128 }
  0x13   : > { %p1797_p11 = pnand %p1418_p9, %p1766_p1  ;;  %p1511_p12 = scmp.ne.s32.totalorder %s2141_s1, %s1510_s9 }
  0x14   : > { %p1517_p5 = scmp.lt.u32.totalorder %s1510_s9, %s2141_s1 }
  0x15   : > { %p1512_p13 = pneg %p1797_p11 }
  0x17   : > { %p1513_p0 = pnand %p1512_p13, %p1511_p12 }
  0x19   : > { %p1514_p3 = pneg %p1513_p0 }
  0x1b   : > { %p1519_p7 = pnand %p1517_p5, %p1514_p3 }
  0x1d   : > { %1522 = shalt.err (!%p1519_p7)
}
  0x1e   : > { %s1523_s14 = scalar_lea.vmem %s1790_s29, 128  ;;  %p1531_p1 = scmp.lt.s32.totalorder %s1790_s29, %s1790_s29 }
  0x1f   : > { %p1524_p9 = scmp.ne.s32.totalorder %s1790_s29, %s1523_s14  ;;  %p1532_p12 = scmp.lt.s32.totalorder %s1523_s14, %s1523_s14 }
  0x21   : > { %p1526_p10 = pnand %p1524_p9, %p1512_p13  ;;  %p1533_p0 = por %p1532_p12, %p1531_p1 }
  0x23   : > { %p1527_p6 = pneg %p1526_p10 }
  0x25   : > { %p1534_p4 = pnand %p1533_p0, %p1527_p6 }
  0x27   : > { %1537 = shalt.err (!%p1534_p4)
}
  0x28   : > { %s1686_s21 = smov 64   ;;  %s1687_s22 = smov 4  }
  0x29   : > { %1421 = dma.hbm_to_vmem [thread:$0]  (!%p1797_p11), %s2141_s1, 128, %s1790_s29, [#allocation6], %s1686_s21, %s1686_s21, %s1687_s22  }
  0x2a   : > { %s1538_s9 = scalar_lea.hbm %s2142_s2, 64 }
  0x2b   : > { %p1539_p1 = scmp.ne.s32.totalorder %s2142_s2, %s1538_s9  ;;  %p1545_p10 = scmp.lt.u32.totalorder %s1538_s9, %s2142_s2 }
  0x2d   : > { %p1541_p4 = pnand %p1539_p1, %p1512_p13 }
  0x2f   : > { %p1542_p6 = pneg %p1541_p4 }
  0x31   : > { %p1547_p3 = pnand %p1545_p10, %p1542_p6 }
  0x33   : > { %1550 = shalt.err (!%p1547_p3)
}
  0x34   : > { %s1551_s29 = scalar_lea.vmem %s1801_s6, 64  ;;  %p1559_p12 = scmp.lt.s32.totalorder %s1801_s6, %s1801_s6 }
  0x35   : > { %p1552_p5 = scmp.ne.s32.totalorder %s1801_s6, %s1551_s29  ;;  %p1560_p0 = scmp.lt.s32.totalorder %s1551_s29, %s1551_s29 }
  0x37   : > { %p1554_p7 = pnand %p1552_p5, %p1512_p13  ;;  %p1561_p1 = por %p1560_p0, %p1559_p12 }
  0x39   : > { %p1555_p9 = pneg %p1554_p7 }
  0x3b   : > { %p1562_p4 = pnand %p1561_p1, %p1555_p9 }
  0x3d   : > { %1565 = shalt.err (!%p1562_p4)
}
  0x3e   : > { %1424 = dma.hbm_to_vmem [thread:$0]  (!%p1797_p11), %s2142_s2, 64, %s1801_s6, [#allocation6]  }
  0x3f   : > { %s33_s22 = sadd.s32 1, %s1678_s19  ;;  %s42_s28 = sadd.s32 1, %s1670_s17 }
  0x40   : > { %p35_p13 = scmp.ge.s32.totalorder %s33_s22, 2  ;;  %p49_p6 = scmp.ne.s32.totalorder %s1670_s17, %s1666_s16 }
  0x41   : > { %p50_p10 = scmp.eq.s32.totalorder %s1682_s20, 0  ;;  %p1435_p3 = scmp.lt.s32.totalorder %s1682_s20, 2 }
  0x42   : > { %s2168_s22 = smov (%p35_p13, %s33_s22), 0  ;;  %p1865_p7 = por %p1770_p2, %p49_p6 }
  0x43   : > { %p51_p5 = por %p50_p10, %p49_p6  ;;  %s37_s5 = ssub.s32 %s1678_s19, %s2168_s22 }
  0x44   : > { %s2155_s30 = scalar_select %p1865_p7, 1, 0 }
  0x45   : > { %s197_s7 = sand.u32 1, %s1670_s17   ;;  %p40_p9 = scmp.eq.s32.totalorder %s37_s5, 0 }
  0x46   : > { %s1362_s6 = sshll.u32 %s197_s7, 5  ;;  %s1387_s8 = sshll.u32 %s1678_s19, 9 }
  0x47   : > { %s1874_s9 = scalar_select %p40_p9, %s1670_s17, %s42_s28  }
  0x48   : > { %s1879_s12 = scalar_lea.hbm %s2140_s0, %s1387_s8  ;;  %s201_s24 = scalar_lea.vmem [#allocation2], %s1362_s6 }
  0x49   : > { %s209_s13 = sshll.u32 %s201_s24, 4  ;;  %p1883_p2 = pnand %p1435_p3, %p51_p5  ;;  %s1887_s13 = int_to_ptr.vmem [resolvable:$true] %s209_s13 }
  0x4a   : > { %s1889_s14 = scalar_lea.sflag [#allocation3], %s197_s7  ;;  %s1566_s21 = scalar_lea.hbm %s1879_s12, 512 }
  0x4b   : > { %p1567_p11 = scmp.ne.s32.totalorder %s1879_s12, %s1566_s21  ;;  %p1568_p12 = pneg %p1883_p2 }
  0x4c   : > { %s1571_s6 = scalar_lea.hbm %s2140_s0, 1024  ;;  %p1572_p4 = scmp.lt.u32.totalorder %s1879_s12, %s2140_s0 }
  0x4d   : > { %p1569_p0 = pnand %p1568_p12, %p1567_p11  ;;  %p1573_p13 = scmp.lt.u32.totalorder %s1571_s6, %s1566_s21 }
  0x4e   : > { %p1575_p10 = scmp.lt.u32.totalorder %s1566_s21, %s1879_s12 }
  0x4f   : > { %p1570_p1 = pneg %p1569_p0  ;;  %p1574_p6 = por %p1573_p13, %p1572_p4 }
  0x51   : > { %p1576_p3 = por %p1575_p10, %p1574_p6 }
  0x53   : > { %p1577_p5 = pnand %p1576_p3, %p1570_p1 }
  0x55   : > { %1580 = shalt.err (!%p1577_p5)
}
  0x56   : > { %s1581_s7 = scalar_lea.vmem %s1887_s13, 512  ;;  %s1688_s11 = smov [#allocation2]  }
  0x57   : > { %p1582_p9 = scmp.ne.s32.totalorder %s1887_s13, %s1581_s7  ;;  %s1586_s24 = sshll.u32 %s1688_s11, 4  ;;  %s1587_s24 = int_to_ptr.vmem [resolvable:$false] %s1586_s24 }
  0x58   : > { %s1588_s28 = scalar_lea.vmem %s1587_s24, 1024  ;;  %p1589_p7 = scmp.lt.s32.totalorder %s1887_s13, %s1587_s24 }
  0x59   : > { %p1584_p11 = pnand %p1582_p9, %p1568_p12  ;;  %p1590_p4 = scmp.lt.s32.totalorder %s1588_s28, %s1581_s7 }
  0x5b   : > { %p1585_p0 = pneg %p1584_p11  ;;  %p1591_p13 = por %p1590_p4, %p1589_p7 }
  0x5d   : > { %p1592_p6 = pnand %p1591_p13, %p1585_p0 }
  0x5f   : > { %1595 = shalt.err (!%p1592_p6)
}
  0x60   : > { %s1689_s21 = smov 128   ;;  %s1690_s5 = smov 8  }
  0x61   : > { %1428 = dma.hbm_to_vmem [thread:$0]  (!%p1883_p2), %s1879_s12, 512, %s1887_s13, %s1889_s14, %s1689_s21, %s1689_s21, %s1690_s5  }
  0x62   : > { %221 = sbr.rel (%p1786_p8) target bundleno = 1022 (0x3fe), region = 36  ;;  %s1920_s6 = sand.u32 (!%p1786_p8), 1, %s1666_s16  }
  0x63   : > { %s1366_s8 = sshll.u32 (!%p1786_p8), %s1920_s6, 5  ;;  %s224_s10 = scalar_lea.sflag (!%p1786_p8), [#allocation3], %s1920_s6 }
  0x64   : > { %s227_s7 = scalar_lea.vmem (!%p1786_p8), [#allocation2], %s1366_s8  ;;  %p2157_p7 = scmp.ne.s32.totalorder (!%p1786_p8), %s2151_s25, 0 }
  0x69   : > { %1649 = dma.done.wait (%p2157_p7), %s224_s10, 512  }
  0x6a   : > { %1651 = vsyncadd (%p2157_p7), %s224_s10, 4294966784  ;;  %p2158_p12 = scmp.ne.s32.totalorder %s2149_s23, 0 }
  0x6c   : > { %1653 = dma.done.wait (%p2158_p12), [#allocation6], 192  }
  0x6d   : > { %1655 = vsyncadd (%p2158_p12), [#allocation6], 4294967104  ;;  %v1508_v0 = vld [vmem:[#allocation5] sm:$0xff]   ;;  %v262_v2 = vld [vmem:[%s227_s7 + $0x8] sm:$0xff]  ;;  %vm275_vm0 = vcmask 130048   ;;  %s1691_s23 = smov 112   ;;  %v365_v15 = vlaneseq }
  0x6e   : > { %v261_v1 = vld [vmem:[%s227_s7] sm:$0xff]  ;;  %v263_v3 = vld [vmem:[%s227_s7 + $0x10] sm:$0xff]  ;;  %1394 = vmatprep.subr.bf16.mxu0 %v1508_v0  ;;  %v264_v5 = vld [vmem:[%s227_s7 + $0x18] sm:$0xff]  ;;  %v1692_v13 = vmov 1983009808   ;;  %v1694_v20 = vmov 0  }
  0x6f   : > { %v265_v4 = vpack.c.bf16 %v262_v2, %v261_v1  ;;  %1395 = vmatpush3.bf16.msra.mxu0 %v1508_v0  ;;  %v266_v6 = vpack.c.bf16 %v264_v5, %v263_v3  ;;  %v363_v14 = vunpack.c.l.s4 %v1692_v13  ;;  %v1936_v17 = vshrl.u32 %v365_v15, 7  ;;  %s1695_s25 = smov 64   ;;  %s1697_s27 = smov 80  }
  0x70   : > { %v1693_v18 = vmov 1934713408   ;;  %v1940_v21 = vpack.i.b16 %v1694_v20, %v1694_v20  ;;  %vm1698_vm1 = vmmov 0   ;;  %s1699_s12 = smov 16   ;;  %s1700_s13 = smov 48   ;;  %vm890_vm2 = vcmask 261120  }
  0x71   : > { %1396 = vmatprep.mubr.msk.bf16.mxu0 %vm275_vm0, %v265_v4  ;;  %v364_v16 = vunpack.c.0.s8 %v363_v14  ;;  %v378_v19 = vunpack.c.l.s4 %v1693_v18  ;;  %s1701_s29 = smov 32   ;;  %s1702_s14 = smov 96   ;;  %vm893_vm3 = vcmask 392192   ;;  %vm896_vm4 = vcmask 523264  }
  0x72   : > { %1397 = vmatmul.mubr.msk.bf16.vlgmr.msra.gmra.mrb[0].mxu0 %vm275_vm0, %v266_v6  ;;  %vm899_vm5 = vcmask 654336   ;;  %vm902_vm6 = vcmask 785408   ;;  %vm905_vm7 = vcmask 916480   ;;  %vm929_vm8 = vcmask 1043456   ;;  %s1369_s28 = sshll.u32 %s1920_s6, 6  ;;  %s1388_s21 = sshll.u32 %s1674_s18, 10 }
  0x73   : > { %v1943_v22 = vsub.s32 %v364_v16, %v1936_v17  ;;  %v379_v23 = vunpack.c.0.s8 %v378_v19  ;;  %vm925_vm9 = vcmask 64512   ;;  %s259_s5 = scalar_lea.vmem [#allocation8], %s1369_s28  ;;  %s1238_s18 = scalar_lea.sflag [#allocation4], %s1920_s6 }
  0x74   : > { %s1252_s8 = sshll.u32 %s259_s5, 4  ;;  %p2159_p2 = scmp.ne.s32.totalorder %s2155_s30, 0  ;;  %s2083_s8 = int_to_ptr.vmem [resolvable:$true] %s1252_s8 }
  0x75   : > { %v1946_v28 = vsub.s32 %v379_v23, %v1936_v17 }
 0x145   : > { %v1398_v7 = vpop.f32.mrb[0].mxu0 }
 0x146   : > { %v316_v8 = vpop.f32.mrb[1].mxu0 }
 0x147   : > { %v1399_v9 = vpop.f32.mrb[2].mxu0 }
 0x148   : > { %v332_v10 = vpack.c.bf16 %v1399_v9, %v1398_v7  ;;  %v319_v11 = vpop.f32.mrb[3].mxu0 }
 0x149   : > { %v331_v12 = vpack.c.bf16 %v319_v11, %v316_v8 }
 0x14a   : > { %v357_v43 = vshrl.u32 %v332_v10, 16 }
 0x14b   : > { %335 = vrot.lane.b32.xlu0 %v331_v12, %s1691_s23  ;;  %v343_v25 = vshrl.u32 %v331_v12, 16 }
 0x14f   : > { %337 = vrot.lane.b32.xlu0 %v332_v10, %s1691_s23 }
 0x1bd   : > { %v336_v24 = vpop.permute.xlu0 %335 }
 0x1be   : > { %v341_v26 = vpack.i.b16 %v336_v24, %v331_v12  ;;  %v344_v27 = vshrl.u32 %v336_v24, 16 }
 0x1c0   : > { %v345_v29 = vpack.i.b16 %v344_v27, %v343_v25  ;;  %v361_v30 = vcombine.high %v341_v26, %v1940_v21  ;;  %v368_v31 = vrot.slane %v341_v26, %v1943_v22 }
 0x1c1   : > { %v338_v32 = vpop.permute.xlu0 %337 }
 0x1c2   : > { %v375_v33 = vrot.slane %v361_v30, %v1943_v22  ;;  %v376_v34 = vcombine.high %v368_v31, %v1694_v20  ;;  %v410_v35 = vcombine.high %v345_v29, %v1940_v21  ;;  %v417_v36 = vrot.slane %v345_v29, %v1943_v22 }
 0x1c3   : > { %v355_v37 = vpack.i.b16 %v338_v32, %v332_v10  ;;  %v358_v38 = vshrl.u32 %v338_v32, 16  ;;  %v383_v39 = vrot.slane %v368_v31, %v1946_v28 }
 0x1c4   : > { %v390_v40 = vrot.slane %v376_v34, %v1946_v28  ;;  %v391_v41 = vcombine.high %v375_v33, %v1694_v20  ;;  %v424_v42 = vrot.slane %v410_v35, %v1943_v22  ;;  %v398_v44 = vrot.slane %v375_v33, %v1946_v28 }
 0x1c5   : > { %v425_v45 = vcombine.high %v417_v36, %v1694_v20  ;;  %v459_v46 = vcombine.high %v355_v37, %v1940_v21  ;;  %v432_v48 = vrot.slane %v417_v36, %v1946_v28  ;;  %v359_v53 = vpack.i.b16 %v358_v38, %v357_v43 }
 0x1c6   : > { %v405_v47 = vrot.slane %v391_v41, %v1946_v28  ;;  %v440_v49 = vcombine.high %v424_v42, %v1694_v20  ;;  %v557_v50 = vcombine.low %v383_v39, %v390_v40  ;;  %v1373_v52 = vcombine.high %v383_v39, %v390_v40 }
 0x1c7   : > { %v439_v51 = vrot.slane %v425_v45, %v1946_v28  ;;  %v466_v54 = vrot.slane %v355_v37, %v1943_v22  ;;  %v447_v55 = vrot.slane %v424_v42, %v1946_v28  ;;  %v473_v61 = vrot.slane %v459_v46, %v1943_v22 }
 0x1c8   : > { %v454_v56 = vrot.slane %v440_v49, %v1946_v28  ;;  %v605_v57 = vcombine.low %v398_v44, %v405_v47  ;;  %v1375_v58 = vcombine.high %v398_v44, %v405_v47  ;;  %v564_v63 = vrot.slane %v557_v50, %v1943_v22 }
 0x1c9   : > { %v581_v59 = vcombine.low %v432_v48, %v439_v51  ;;  %v1374_v60 = vcombine.high %v432_v48, %v439_v51  ;;  %v474_v62 = vcombine.high %v466_v54, %v1694_v20  ;;  %v572_v0 = vrot.slane %v1373_v52, %v1943_v22 }
 0x1ca   : > { %v629_v1 = vcombine.low %v447_v55, %v454_v56  ;;  %v1376_v2 = vcombine.high %v447_v55, %v454_v56  ;;  %v612_v5 = vrot.slane %v605_v57, %v1943_v22  ;;  %v620_v6 = vrot.slane %v1375_v58, %v1943_v22 }
 0x1cb   : > { %v588_v3 = vrot.slane %v581_v59, %v1943_v22  ;;  %v596_v4 = vrot.slane %v1374_v60, %v1943_v22  ;;  %v488_v9 = vrot.slane %v474_v62, %v1946_v28  ;;  %v481_v11 = vrot.slane %v466_v54, %v1946_v28 }
 0x1cc   : > { %v636_v7 = vrot.slane %v629_v1, %v1943_v22  ;;  %v644_v8 = vrot.slane %v1376_v2, %v1943_v22  ;;  %v489_v12 = vcombine.high %v473_v61, %v1694_v20  ;;  %v573_v13 = vcombine.low %v564_v63, %v572_v0 }
 0x1cd   : > { %v597_v10 = vcombine.low %v588_v3, %v596_v4  ;;  %v508_v14 = vcombine.high %v359_v53, %v1940_v21  ;;  %v515_v15 = vrot.slane %v359_v53, %v1943_v22  ;;  %v621_v16 = vcombine.low %v612_v5, %v620_v6 }
 0x1ce   : > { %v496_v18 = vrot.slane %v473_v61, %v1946_v28  ;;  %v503_v19 = vrot.slane %v489_v12, %v1946_v28  ;;  %v653_v23 = vcombine.low %v481_v11, %v488_v9  ;;  %v645_v24 = vcombine.low %v636_v7, %v644_v8 }
 0x1cf   : > { %v522_v25 = vrot.slane %v508_v14, %v1943_v22  ;;  %v523_v26 = vcombine.high %v515_v15, %v1694_v20  ;;  %v1377_v27 = vcombine.high %v481_v11, %v488_v9  ;;  %v604_v29 = vrot.slane %v597_v10, %v1946_v28 }
 0x1d0   : > { %v660_v30 = vrot.slane %v653_v23, %v1943_v22  ;;  %v701_v31 = vcombine.low %v496_v18, %v503_v19  ;;  %v1379_v21 = vcombine.high %v496_v18, %v503_v19  ;;  %v530_v32 = vrot.slane %v515_v15, %v1946_v28 }
 0x1d1   : > { %v537_v33 = vrot.slane %v523_v26, %v1946_v28  ;;  %v538_v34 = vcombine.high %v522_v25, %v1694_v20  ;;  %v668_v35 = vrot.slane %v1377_v27, %v1943_v22  ;;  %v580_v36 = vrot.slane %v573_v13, %v1946_v28 }
 0x1d2   : > { %v545_v37 = vrot.slane %v522_v25, %v1946_v28  ;;  %v708_v38 = vrot.slane %v701_v31, %v1943_v22  ;;  %v716_v39 = vrot.slane %v1379_v21, %v1943_v22  ;;  %v652_v44 = vrot.slane %v645_v24, %v1946_v28 }
 0x1d3   : > { %v552_v40 = vrot.slane %v538_v34, %v1946_v28  ;;  %v669_v41 = vcombine.low %v660_v30, %v668_v35  ;;  %v677_v42 = vcombine.low %v530_v32, %v537_v33  ;;  %v1378_v43 = vcombine.high %v530_v32, %v537_v33 }
 0x1d4   : > { %v754_v48 = vshrl.u32 %v604_v29, 16  ;;  %v628_v49 = vrot.slane %v621_v16, %v1946_v28  ;;  %v717_v50 = vcombine.low %v708_v38, %v716_v39  ;;  %v753_v52 = vshrl.u32 %v580_v36, 16 }
 0x1d5   : > { %v684_v45 = vrot.slane %v677_v42, %v1943_v22  ;;  %v692_v46 = vrot.slane %v1378_v43, %v1943_v22  ;;  %v725_v47 = vcombine.low %v545_v37, %v552_v40  ;;  %v1380_v51 = vcombine.high %v545_v37, %v552_v40 }
 0x1d6   : > { %v676_v53 = vrot.slane %v669_v41, %v1946_v28  ;;  %v762_v57 = vshrl.u32 %v652_v44, 16  ;;  %v755_v59 = vpack.i.b16 %v754_v48, %v753_v52  ;;  %v724_v60 = vrot.slane %v717_v50, %v1946_v28 }
 0x1d7   : > { %v693_v54 = vcombine.low %v684_v45, %v692_v46  ;;  %v732_v55 = vrot.slane %v725_v47, %v1943_v22  ;;  %v740_v56 = vrot.slane %v1380_v51, %v1943_v22  ;;  %v761_v62 = vshrl.u32 %v628_v49, 16 }
 0x1d8   : > { %v769_v63 = vshrl.u32 %v676_v53, 16  ;;  %v751_v0 = vpack.i.b16 %v604_v29, %v580_v36  ;;  %v759_v7 = vpack.i.b16 %v652_v44, %v628_v49  ;;  %v777_v8 = vshrl.u32 %v724_v60, 16 }
 0x1d9   : > { %v700_v58 = vrot.slane %v693_v54, %v1946_v28  ;;  %v741_v61 = vcombine.low %v732_v55, %v740_v56  ;;  %v763_v3 = vpack.i.b16 %v762_v57, %v761_v62  ;;  %v1696_v42 = vmov 0.0  }
 0x1da   : > { %v781_v6 = vcombine.low %v751_v0, %v755_v59  ;;  %1400 = vmatprep.subr.bf16.mxu1 %v1696_v42  ;;  %1402 = vmatprep.mubr.msk.bf16.mxu1 %vm1698_vm1, %v1696_v42 }
 0x1db   : > { %v770_v1 = vshrl.u32 %v700_v58, 16  ;;  %v748_v2 = vrot.slane %v741_v61, %v1946_v28  ;;  %v767_v4 = vpack.i.b16 %v700_v58, %v676_v53  ;;  %v815_v13 = vcombine.low %v759_v7, %v763_v3 }
 0x1dc   : > { %v788_v14 = vrot.slane %v781_v6, %v1943_v22 }
 0x1dd   : > { %v771_v5 = vpack.i.b16 %v770_v1, %v769_v63  ;;  %v778_v9 = vshrl.u32 %v748_v2, 16  ;;  %v775_v11 = vpack.i.b16 %v748_v2, %v724_v60  ;;  %v822_v23 = vrot.slane %v815_v13, %v1943_v22  ;;  %v1130_v13 = vld [vmem:[%s2143_s3] sm:$0xff] }
 0x1df   : > { %v789_v10 = vcombine.low %v767_v4, %v771_v5  ;;  %v779_v12 = vpack.i.b16 %v778_v9, %v777_v8  ;;  %v1703_v9 = vmov 1966171168  }
 0x1e1   : > { %v796_v15 = vrot.slane %v789_v10, %v1943_v22  ;;  %v823_v16 = vcombine.low %v775_v11, %v779_v12  ;;  %v1134_v10 = vunpack.c.l.s4 %v1703_v9 }
 0x1e3   : > { %v797_v18 = vcombine.low %v788_v14, %v796_v15  ;;  %v798_v19 = vcombine.high %v788_v14, %v796_v15  ;;  %v830_v24 = vrot.slane %v823_v16, %v1943_v22  ;;  %v1135_v12 = vunpack.c.0.s8 %v1134_v10 }
 0x1e4   : > { %v1132_v16 = vcombine.high %v1130_v13, %v1130_v13 }
 0x1e5   : > { %v812_v25 = vrot.slane %v798_v19, %v1946_v28  ;;  %v805_v26 = vrot.slane %v797_v18, %v1946_v28  ;;  %v832_v27 = vcombine.high %v822_v23, %v830_v24  ;;  %v831_v29 = vcombine.low %v822_v23, %v830_v24 }
 0x1e6   : > { %v1138_v15 = vsub.s32 %v1135_v12, %v1936_v17 }
 0x1e7   : > { %v846_v30 = vrot.slane %v832_v27, %v1946_v28  ;;  %v839_v31 = vrot.slane %v831_v29, %v1946_v28  ;;  %v864_v21 = vshrl.u32 %v812_v25, 16  ;;  %v813_v32 = vcombine.high %v805_v26, %v1694_v20 }
 0x1e8   : > { %v852_v39 = vshrl.u32 %v805_v26, 16  ;;  %v814_v45 = vcombine.high %v812_v25, %v1694_v20  ;;  %v1139_v19 = vrot.slane %v1130_v13, %v1138_v15  ;;  %v1146_v23 = vrot.slane %v1132_v16, %v1138_v15 }
 0x1e9   : > { %v863_v33 = vpack.i.b16 %v846_v30, %v812_v25  ;;  %v865_v34 = vshrl.u32 %v846_v30, 16  ;;  %v853_v35 = vshrl.u32 %v839_v31, 16  ;;  %v847_v36 = vcombine.high %v839_v31, %v1694_v20 }
 0x1ea   : > { %v851_v37 = vpack.i.b16 %v839_v31, %v805_v26  ;;  %v848_v41 = vcombine.high %v846_v30, %v1694_v20  ;;  %v858_v44 = vshrl.u32 %v813_v32, 16  ;;  %v870_v49 = vshrl.u32 %v814_v45, 16  ;;  %v908_v20 = vld [vmem:[#allocation7] sm:$0xf] }
 0x1eb   : > { %879 = vrot.lane.b32.xlu1 %v863_v33, %s1695_s25  ;;  %v866_v38 = vpack.i.b16 %v865_v34, %v864_v21  ;;  %v859_v40 = vshrl.u32 %v847_v36, 16  ;;  %v854_v43 = vpack.i.b16 %v853_v35, %v852_v39  ;;  %v857_v48 = vpack.i.b16 %v847_v36, %v813_v32 }
 0x1ec   : > { %v871_v47 = vshrl.u32 %v848_v41, 16  ;;  %v869_v51 = vpack.i.b16 %v848_v41, %v814_v45  ;;  %v1147_v25 = vcombine.high %v1139_v19, %v1139_v19  ;;  %v1148_v27 = vcombine.high %v1146_v23, %v1146_v23 }
 0x1ed   : > { %881 = vrot.lane.b32.xlu0 %v866_v38, %s1697_s27  ;;  %v860_v46 = vpack.i.b16 %v859_v40, %v858_v44  ;;  %v2039_v29 = vrot.slane %v1139_v19, %v1138_v15  ;;  %v2041_v32 = vrot.slane %v1146_v23, %v1138_v15  ;;  %v2044_v33 = vsub.s32 0, %v1936_v17 }
 0x1ee   : > { %v872_v50 = vpack.i.b16 %v871_v47, %v870_v49  ;;  %v1169_v34 = vrot.slane %v1147_v25, %v1138_v15 }
 0x1ef   : > { %873 = vrot.lane.b32.xlu1 %v854_v43, %s1699_s12  ;;  %v1177_v40 = vcombine.high %v2039_v29, %v2039_v29  ;;  %v1178_v43 = vcombine.high %v2041_v32, %v2041_v32  ;;  %v1184_v17 = vrot.slane %v2039_v29, %v2044_v33 }
 0x1f0   : > { %v1179_v45 = vcombine.high %v1169_v34, %v1169_v34 }
 0x1f1   : > { %877 = vrot.lane.b32.xlu0 %v860_v46, %s1700_s13  ;;  %v1200_v46 = vrot.slane %v2041_v32, %v2044_v33  ;;  %v1208_v9 = vrot.slane %v1178_v43, %v2044_v33 }
 0x1f3   : > { %875 = vrot.lane.b32.xlu1 %v857_v48, %s1701_s29 }
 0x1f5   : > { %885 = vrot.lane.b32.xlu0 %v872_v50, %s1691_s23 }
 0x1f7   : > { %883 = vrot.lane.b32.xlu1 %v869_v51, %s1702_s14 }
 0x21a   : > { %909 = vxpose.xlu1.c.b16.start.end [1/1] (short) (narrow) %v908_v20, 16 }
 0x25d   : > { %v880_v52 = vpop.permute.xlu1 %879 }
 0x25f   : > { %v882_v53 = vpop.permute.xlu0 %881 }
 0x261   : > { %v874_v54 = vpop.permute.xlu1 %873 }
 0x262   : > { %v889_v56 = vsel %vm275_vm0, %v851_v37, %v874_v54  ;;  %v1176_v37 = vrot.slane %v1148_v27, %v1138_v15 }
 0x263   : > { %v878_v55 = vpop.permute.xlu0 %877 }
 0x264   : > { %v1180_v20 = vcombine.high %v1176_v37, %v1176_v37 }
 0x265   : > { %v876_v57 = vpop.permute.xlu1 %875 }
 0x266   : > { %v892_v58 = vsel %vm890_vm2, %v889_v56, %v876_v57  ;;  %v1212_v10 = vrot.slane %v1180_v20, %v2044_v33 }
 0x267   : > { %v895_v59 = vsel %vm893_vm3, %v892_v58, %v878_v55  ;;  %v886_v63 = vpop.permute.xlu0 %885  ;;  %v1188_v58 = vrot.slane %v1169_v34, %v2044_v33 }
 0x268   : > { %v898_v60 = vsel %vm896_vm4, %v895_v59, %v880_v52  ;;  %v1192_v59 = vrot.slane %v1177_v40, %v2044_v33 }
 0x269   : > { %v901_v61 = vsel %vm899_vm5, %v898_v60, %v882_v53  ;;  %v884_v62 = vpop.permute.xlu1 %883 }
 0x26a   : > { %v904_v0 = vsel %vm902_vm6, %v901_v61, %v884_v62 }
 0x26b   : > { %v907_v1 = vsel %vm905_vm7, %v904_v0, %v886_v63 }
 0x26c   : > { %v930_v2 = vsel %vm929_vm8, %v907_v1, 0 }
 0x26d   : > { %1401 = vmatpush3.bf16.msra.mxu1 %v930_v2  ;;  %v1196_v2 = vrot.slane %v1179_v45, %v2044_v33 }
 0x280   : > { %v917_v3 = vpop.trf.xlu1 }
 0x281   : > { %1403 = vmatmul.mubr.msk.bf16.vlgmr.msra.gmra.mrb[0].mxu1 %vm925_vm9, %v917_v3  ;;  %v1204_v3 = vrot.slane %v1176_v37, %v2044_v33 }
 0x354   : > { %v966_v4 = vpop.f32.mrb[0].mxu1 }
 0x355   : > { %973 = vrot.lane.b32.xlu0 %v966_v4, %s1691_s23  ;;  %v1404_v5 = vpop.f32.mrb[1].mxu1  ;;  %s2081_s23 = scalar_lea.hbm %s2144_s4, %s1388_s21 }
 0x356   : > { %v969_v6 = vpop.f32.mrb[2].mxu1 }
 0x357   : > { %v1405_v7 = vpop.f32.mrb[3].mxu1 }
 0x359   : > { %976 = vrot.lane.b32.xlu0 %v966_v4, %s1702_s14 }
 0x35d   : > { %979 = vrot.lane.b32.xlu0 %v966_v4, %s1697_s27  ;;  %s1704_s27 = smov [#allocation8]  }
 0x361   : > { %982 = vrot.lane.b32.xlu0 %v966_v4, %s1695_s25  ;;  %s1596_s25 = scalar_lea.vmem %s2083_s8, 1024 }
 0x362   : > { %p1597_p8 = scmp.ne.s32.totalorder %s2083_s8, %s1596_s25 }
 0x364   : > { %p1598_p1 = pnand %p1597_p8, %p2159_p2 }
 0x365   : > { %985 = vrot.lane.b32.xlu0 %v966_v4, %s1700_s13 }
 0x366   : > { %p1599_p10 = pneg %p1598_p1 }
 0x369   : > { %988 = vrot.lane.b32.xlu0 %v966_v4, %s1701_s29 }
 0x36d   : > { %991 = vrot.lane.b32.xlu0 %v966_v4, %s1699_s12  ;;  %s1600_s12 = sshll.u32 %s1704_s27, 4  ;;  %s1601_s12 = int_to_ptr.vmem [resolvable:$false] %s1600_s12 }
 0x36e   : > { %s1602_s13 = scalar_lea.vmem %s1601_s12, 2048  ;;  %p1603_p3 = scmp.lt.s32.totalorder %s2083_s8, %s1601_s12 }
 0x36f   : > { %p1604_p5 = scmp.lt.s32.totalorder %s1602_s13, %s1596_s25 }
 0x371   : > { %p1605_p9 = por %p1604_p5, %p1603_p3 }
 0x373   : > { %p1606_p11 = pnand %p1605_p9, %p1599_p10 }
 0x3c7   : > { %v974_v8 = vpop.permute.xlu0 %973 }
 0x3cb   : > { %v977_v11 = vpop.permute.xlu0 %976 }
 0x3cc   : > { %v994_v30 = vcombine.low %v966_v4, %v977_v11  ;;  %v995_v35 = vcombine.high %v966_v4, %v977_v11 }
 0x3ce   : > { %v1002_v41 = vrot.slane %v994_v30, %v1943_v22  ;;  %v1009_v49 = vrot.slane %v995_v35, %v1943_v22 }
 0x3cf   : > { %v980_v14 = vpop.permute.xlu0 %979 }
 0x3d0   : > { %v1010_v26 = vcombine.low %v974_v8, %v980_v14  ;;  %v1011_v31 = vcombine.high %v974_v8, %v980_v14 }
 0x3d2   : > { %v1018_v36 = vrot.slane %v1010_v26, %v1943_v22  ;;  %v1025_v42 = vrot.slane %v1011_v31, %v1943_v22 }
 0x3d3   : > { %v983_v18 = vpop.permute.xlu0 %982 }
 0x3d4   : > { %v1058_v50 = vcombine.low %v1002_v41, %v1018_v36  ;;  %v1059_v51 = vcombine.high %v1002_v41, %v1018_v36  ;;  %v1074_v56 = vcombine.low %v1009_v49, %v1025_v42  ;;  %v1075_v57 = vcombine.high %v1009_v49, %v1025_v42 }
 0x3d6   : > { %v1066_v0 = vrot.slane %v1058_v50, %v1946_v28  ;;  %v1073_v1 = vrot.slane %v1059_v51, %v1946_v28  ;;  %v1082_v7 = vrot.slane %v1074_v56, %v1946_v28  ;;  %v1089_v8 = vrot.slane %v1075_v57, %v1946_v28 }
 0x3d7   : > { %v986_v24 = vpop.permute.xlu0 %985 }
 0x3db   : > { %v989_v21 = vpop.permute.xlu0 %988 }
 0x3dc   : > { %v1026_v38 = vcombine.low %v983_v18, %v989_v21  ;;  %v1027_v39 = vcombine.high %v983_v18, %v989_v21 }
 0x3de   : > { %v1034_v52 = vrot.slane %v1026_v38, %v1943_v22  ;;  %v1041_v53 = vrot.slane %v1027_v39, %v1943_v22 }
 0x3df   : > { %v992_v44 = vpop.permute.xlu0 %991 }
 0x3e0   : > { %v1042_v47 = vcombine.low %v986_v24, %v992_v44  ;;  %v1043_v48 = vcombine.high %v986_v24, %v992_v44 }
 0x3e2   : > { %v1050_v54 = vrot.slane %v1042_v47, %v1943_v22  ;;  %v1057_v55 = vrot.slane %v1043_v48, %v1943_v22 }
 0x3e4   : > { %v1090_v60 = vcombine.low %v1034_v52, %v1050_v54  ;;  %v1091_v61 = vcombine.high %v1034_v52, %v1050_v54  ;;  %v1106_v62 = vcombine.low %v1041_v53, %v1057_v55  ;;  %v1107_v63 = vcombine.high %v1041_v53, %v1057_v55 }
 0x3e6   : > { %v1098_v22 = vrot.slane %v1090_v60, %v1946_v28  ;;  %v1105_v4 = vrot.slane %v1091_v61, %v1946_v28  ;;  %v1114_v5 = vrot.slane %v1106_v62, %v1946_v28  ;;  %v1121_v6 = vrot.slane %v1107_v63, %v1946_v28 }
 0x3e8   : > { %v1122_v11 = vcombine.low %v1066_v0, %v1098_v22  ;;  %v1123_v12 = vcombine.high %v1066_v0, %v1098_v22  ;;  %v1124_v13 = vcombine.low %v1073_v1, %v1105_v4  ;;  %v1125_v14 = vcombine.high %v1073_v1, %v1105_v4 }
 0x3e9   : > { %v1126_v15 = vcombine.low %v1082_v7, %v1114_v5  ;;  %v1127_v16 = vcombine.high %v1082_v7, %v1114_v5  ;;  %v1128_v18 = vcombine.low %v1089_v8, %v1121_v6  ;;  %v1129_v19 = vcombine.high %v1089_v8, %v1121_v6 }
 0x3ea   : > { %v1221_v23 = vadd.f32 %v1184_v17, %v1122_v11  ;;  %v1222_v24 = vadd.f32 %v1188_v58, %v1123_v12  ;;  %v1223_v25 = vadd.f32 %v1192_v59, %v1124_v13  ;;  %v1224_v28 = vadd.f32 %v1196_v2, %v1125_v14 }
 0x3eb   : > { %v1225_v26 = vadd.f32 %v1200_v46, %v1126_v15  ;;  %v1226_v27 = vadd.f32 %v1204_v3, %v1127_v16  ;;  %v1227_v29 = vadd.f32 %v1208_v9, %v1128_v18  ;;  %v1228_v30 = vadd.f32 %v1212_v10, %v1129_v19 }
 0x3ec   : > { %1229 = vst.msk [vmem:[%s259_s5] sm:$0xff] %vm275_vm0, %v1221_v23  ;;  %1230 = vst.msk [vmem:[%s259_s5 + $0x8] sm:$0xff] %vm275_vm0, %v1222_v24 }
 0x3ed   : > { %1231 = vst.msk [vmem:[%s259_s5 + $0x10] sm:$0xff] %vm275_vm0, %v1223_v25  ;;  %1232 = vst.msk [vmem:[%s259_s5 + $0x18] sm:$0xff] %vm275_vm0, %v1224_v28 }
 0x3ee   : > { %1233 = vst.msk [vmem:[%s259_s5 + $0x20] sm:$0xff] %vm275_vm0, %v1225_v26  ;;  %1234 = vst.msk [vmem:[%s259_s5 + $0x28] sm:$0xff] %vm275_vm0, %v1226_v27 }
 0x3ef   : > { %1235 = vst.msk [vmem:[%s259_s5 + $0x30] sm:$0xff] %vm275_vm0, %v1227_v29  ;;  %1236 = vst.msk [vmem:[%s259_s5 + $0x38] sm:$0xff] %vm275_vm0, %v1228_v30 }
 0x3f0   : > { %1609 = shalt.err (!%p1606_p11)
}
 0x3f1   : > { %s1610_s29 = scalar_lea.hbm %s2081_s23, 1024  ;;  %s1614_s24 = scalar_lea.hbm %s2144_s4, 2048 }
 0x3f2   : > { %p1611_p0 = scmp.ne.s32.totalorder %s2081_s23, %s1610_s29  ;;  %p1615_p6 = scmp.lt.u32.totalorder %s2081_s23, %s2144_s4 }
 0x3f3   : > { %p1616_p7 = scmp.lt.u32.totalorder %s1614_s24, %s1610_s29  ;;  %p1618_p8 = scmp.lt.u32.totalorder %s1610_s29, %s2081_s23 }
 0x3f4   : > { %p1612_p4 = pnand %p1611_p0, %p2159_p2 }
 0x3f5   : > { %p1617_p12 = por %p1616_p7, %p1615_p6 }
 0x3f6   : > { %p1613_p13 = pneg %p1612_p4 }
 0x3f7   : > { %p1619_p1 = por %p1618_p8, %p1617_p12 }
 0x3f9   : > { %p1620_p10 = pnand %p1619_p1, %p1613_p13 }
 0x3fb   : > { %1623 = shalt.err (!%p1620_p10)
}
 0x3fc   : > { %s1705_s5 = smov 128   ;;  %s1706_s10 = smov 8  }
 0x3fd   : > { %1416 = dma.vmem_to_hbm [thread:$0]  (%p2159_p2), %s2083_s8, 1024, %s2081_s23, %s1238_s18, %s1705_s5, %s1705_s5, %s1706_s10  }
 0x3fe PF: > { %s1267_s7 = sand.u32 1, %s1662_s15   ;;  %p2160_p3 = scmp.ne.s32.totalorder %s2152_s26, 0 }
 0x3ff   : > { %p2161_p5 = scmp.ge.s32.totalorder %s1682_s20, 2  ;;  %s1268_s25 = scalar_lea.sflag [#allocation4], %s1267_s7 }
 0x401   : > { %p1430_p9 = pnand %p2161_p5, %p2160_p3 }
 0x403   : > { %1657 = dma.done.wait (!%p1430_p9), %s1268_s25, 1024  }
 0x404   : > { %1659 = vsyncadd (!%p1430_p9), %s1268_s25, 4294966272  ;;  %s21_s20 = sadd.s32 1, %s1682_s20   ;;  %s2162_s15 = smov %s1666_s16 }
 0x405   : > { %p18_p11 = scmp.ge.s32.totalorder %s21_s20, 4   ;;  %s2163_s16 = smov %s1670_s17 }
 0x406   : > { %s2164_s17 = smov %s1874_s9  ;;  %s2165_s18 = smov %s1678_s19 }
 0x407   : > { %s2166_s19 = smov %s2168_s22  ;;  %20 = sbr.rel (!%p18_p11) target bundleno = 7 (0x7), region = 89 }
 0x40e   :  { %1273 = vsyncpa [#allocation3], 1 }
 0x40f   :  { %1275 = vsyncpa [#allocation3 + $0x1], 1 }
 0x410   :  { %1276 = vsyncpa [#allocation6], 1 }
 0x411   :  { %1277 = vsyncpa [#allocation4], 1 }
 0x412   :  { %1279 = vsyncpa [#allocation4 + $0x1], 1 }

</bundles_post_ra>
